<compile_context>
chip_gen: v6e
topology: v6e:2x2x1
jax: 0.10.0
libtpu: 0.0.40
codegen_flags: <defaults>
</compile_context>

<pallas_src>
import math
import functools

import jax
import jax.numpy as jnp
from jax import lax
from jax.experimental import pallas as pl
from jax.experimental.pallas import tpu as pltpu


def mha_kernel(xq_ref, xk_ref, xv_ref, enc_ref,
               wq_ref, wk_ref, wv_ref, wfc_ref,
               out_ref, k_scratch, v_scratch,
               *, n_heads, d_k, d_v):
    """One grid step == (one batch element, one query tile).

    xq/enc refs: (1, tq, d_model)      xk/xv refs: (1, S, d_model)
    wq/wk refs:  (d_model, H*d_k)      wv ref:     (d_model, H*d_v)
    wfc ref:     (H*d_v, d_model)      out ref:    (1, tq, d_model)
    k_scratch:   (H, S, d_k)           v_scratch:  (H, S, d_v)   [activation dtype]
    """
    H, dk, dv = n_heads, d_k, d_v
    act_dtype = xq_ref.dtype
    tq = xq_ref.shape[1]
    S = xk_ref.shape[1]

    # ---- per-batch K/V projection: computed once, cached in VMEM scratch ----
    @pl.when(pl.program_id(1) == 0)
    def _():
        xk = xk_ref[0]                                                   # (S, d_model)
        xv = xv_ref[0]
        k = jnp.dot(xk, wk_ref[...], preferred_element_type=jnp.float32)  # (S, H*dk)
        v = jnp.dot(xv, wv_ref[...], preferred_element_type=jnp.float32)  # (S, H*dv)
        k_scratch[...] = jnp.transpose(k.reshape(S, H, dk), (1, 0, 2)).astype(k_scratch.dtype)
        v_scratch[...] = jnp.transpose(v.reshape(S, H, dv), (1, 0, 2)).astype(v_scratch.dtype)

    # ---- per-tile Q projection (wide, lane-dense; W_Q pre-scaled by 1/sqrt(dk)) ----
    xq = xq_ref[0]                                                       # (tq, d_model)
    q = jnp.dot(xq, wq_ref[...], preferred_element_type=jnp.float32)     # (tq, H*dk)
    qh = jnp.transpose(q.reshape(tq, H, dk), (1, 0, 2)).astype(act_dtype)  # (H, tq, dk)

    kh = k_scratch[...]                                                  # (H, S, dk)
    vh = v_scratch[...]                                                  # (H, S, dv)

    # ---- scores + numerically-stable softmax (unnormalized) ----
    scores = lax.dot_general(qh, kh, (((2,), (2,)), ((0,), (0,))),
                             preferred_element_type=jnp.float32)         # (H, tq, S)
    m = jnp.max(scores, axis=-1, keepdims=True)
    p = jnp.exp(scores - m)
    l = jnp.sum(p, axis=-1, keepdims=True)                               # (H, tq, 1)

    # ---- context with deferred (exact) normalization ----
    ctx = lax.dot_general(p.astype(act_dtype), vh, (((2,), (1,)), ((0,), (0,))),
                          preferred_element_type=jnp.float32)            # (H, tq, dv)
    ctx = ctx * pl.reciprocal(l, approx=False)

    # ---- fused head-merge + output projection + residual ----
    ctx2 = jnp.transpose(ctx, (1, 0, 2)).reshape(tq, H * dv).astype(wfc_ref.dtype)
    out = jnp.dot(ctx2, wfc_ref[...], preferred_element_type=jnp.float32)  # (tq, d_model)
    out_ref[0] = (out + enc_ref[0].astype(jnp.float32)).astype(out_ref.dtype)


def _pick_tq(S):
    """Largest multiple-of-8 divisor of S (capped) so the grid keeps pipelining."""
    if S % 128 == 0:
        return 128
    best = S
    for t in range(8, min(S, 512) + 1, 8):
        if S % t == 0:
            best = t
    return best


def _vmem_estimate(S, tq, d_model, n_heads, d_k, d_v, act_itemsize, w_itemsize):
    tile_io = 2 * 3 * tq * d_model * act_itemsize            # xq / enc / out (double-buffered)
    kv_io = 2 * 2 * S * d_model * act_itemsize                # K / V activations (double-buffered)
    weights = (2 * d_model * n_heads * d_k
               + d_model * n_heads * d_v
               + n_heads * d_v * d_model) * w_itemsize        # weights (single-buffered)
    scratch = n_heads * S * (d_k + d_v) * act_itemsize        # projected K/V cache
    interm = 3 * n_heads * tq * S * 4 + 2 * n_heads * tq * max(d_k, d_v) * 4
    return tile_io + kv_io + weights + scratch + interm


def multi_head_attention(input_Q, input_K, input_V, enc_inputs,
                         W_Q, W_K, W_V, W_fc, *, n_heads, d_k, d_v, tq=None):
    """W_* are stored as [in_features, out_features] (PyTorch nn.Linear weight^T)."""
    B, S, d_model = input_Q.shape
    assert W_Q.shape == (d_model, n_heads * d_k)
    assert W_V.shape == (d_model, n_heads * d_v)
    assert W_fc.shape == (n_heads * d_v, d_model)

    # Fold 1/sqrt(d_k) into W_Q in f32 first, then cast back (no double rounding).
    scale = 1.0 / math.sqrt(d_k)
    W_Qs = (W_Q.astype(jnp.float32) * scale).astype(W_Q.dtype)

    if tq is None:
        tq = _pick_tq(S)
    assert S % tq == 0, "query tile must divide the sequence length"
    num_q = S // tq

    act_dtype = input_Q.dtype
    kernel = functools.partial(mha_kernel, n_heads=n_heads, d_k=d_k, d_v=d_v)

    q_act_spec = pl.BlockSpec((1, tq, d_model), lambda b, q: (b, q, 0))
    kv_act_spec = pl.BlockSpec((1, S, d_model), lambda b, q: (b, 0, 0))

    def _weight_spec(shape):
        # Constant block index for every grid step -> single-buffer it.
        return pl.BlockSpec(shape, lambda b, q: (0, 0), pipeline_mode=pl.Buffered(1))

    wq_spec = _weight_spec((d_model, n_heads * d_k))
    wk_spec = _weight_spec((d_model, n_heads * d_k))
    wv_spec = _weight_spec((d_model, n_heads * d_v))
    wfc_spec = _weight_spec((n_heads * d_v, d_model))

    est = _vmem_estimate(S, tq, d_model, n_heads, d_k, d_v,
                         jnp.dtype(act_dtype).itemsize, jnp.dtype(W_Q.dtype).itemsize)
    vmem_limit = int(min(100 * 2**20, max(32 * 2**20, 2 * est + (8 << 20))))

    return pl.pallas_call(
        kernel,
        out_shape=jax.ShapeDtypeStruct((B, S, d_model), act_dtype),
        grid_spec=pltpu.PrefetchScalarGridSpec(
            num_scalar_prefetch=0,
            grid=(B, num_q),
            in_specs=[q_act_spec, kv_act_spec, kv_act_spec, q_act_spec,
                      wq_spec, wk_spec, wv_spec, wfc_spec],
            out_specs=pl.BlockSpec((1, tq, d_model), lambda b, q: (b, q, 0)),
            scratch_shapes=[pltpu.VMEM((n_heads, S, d_k), act_dtype),
                            pltpu.VMEM((n_heads, S, d_v), act_dtype)],
        ),
        compiler_params=pltpu.CompilerParams(
            # batch axis parallel (megacore); q axis arbitrary so the per-batch
            # projected K/V scratch is reused across query tiles.
            dimension_semantics=("parallel", "arbitrary"),
            vmem_limit_bytes=vmem_limit,
        ),
    )(input_Q, input_K, input_V, enc_inputs, W_Qs, W_K, W_V, W_fc)


def reference_mha(input_Q, input_K, input_V, enc_inputs,
                  W_Q, W_K, W_V, W_fc, *, n_heads, d_k, d_v):
    """Pure-JAX reference mirroring the PyTorch module exactly."""
    hp = lax.Precision.HIGHEST
    B, S, _ = input_Q.shape
    Q = jnp.einsum("bsd,dh->bsh", input_Q, W_Q, precision=hp)
    K = jnp.einsum("bsd,dh->bsh", input_K, W_K, precision=hp)
    V = jnp.einsum("bsd,dh->bsh", input_V, W_V, precision=hp)
    Q = Q.reshape(B, S, n_heads, d_k).transpose(0, 2, 1, 3)
    K = K.reshape(B, S, n_heads, d_k).transpose(0, 2, 1, 3)
    V = V.reshape(B, S, n_heads, d_v).transpose(0, 2, 1, 3)
    scores = jnp.einsum("bhqd,bhkd->bhqk", Q, K, precision=hp) / jnp.sqrt(jnp.float32(d_k))
    attn = jax.nn.softmax(scores, axis=-1)
    context = jnp.einsum("bhqk,bhkd->bhqd", attn, V, precision=hp)
    context = context.transpose(0, 2, 1, 3).reshape(B, S, n_heads * d_v)
    return jnp.einsum("bsh,hd->bsd", context, W_fc, precision=hp) + enc_inputs


if __name__ == "__main__":
    # Small shapes consistent with the module.
    B, S = 2, 8
    d_model, d_k, d_v, n_heads = 32, 8, 8, 4

    key = jax.random.PRNGKey(0)
    kq, kk, kv, ke, kwq, kwk, kwv, kwf = jax.random.split(key, 8)

    input_Q = jax.random.normal(kq, (B, S, d_model), dtype=jnp.float32)
    input_K = jax.random.normal(kk, (B, S, d_model), dtype=jnp.float32)
    input_V = jax.random.normal(kv, (B, S, d_model), dtype=jnp.float32)
    enc_inputs = jax.random.normal(ke, (B, S, d_model), dtype=jnp.float32)

    # Deterministic synthetic parameters, stored as [in, out] (PyTorch weight^T).
    wscale = 1.0 / math.sqrt(d_model)
    W_Q = jax.random.uniform(kwq, (d_model, d_k * n_heads), jnp.float32, -wscale, wscale)
    W_K = jax.random.uniform(kwk, (d_model, d_k * n_heads), jnp.float32, -wscale, wscale)
    W_V = jax.random.uniform(kwv, (d_model, d_v * n_heads), jnp.float32, -wscale, wscale)
    W_fc = jax.random.uniform(kwf, (n_heads * d_v, d_model), jnp.float32, -wscale, wscale)

    out = multi_head_attention(input_Q, input_K, input_V, enc_inputs,
                               W_Q, W_K, W_V, W_fc,
                               n_heads=n_heads, d_k=d_k, d_v=d_v)
    out = jax.block_until_ready(out)

    ref = reference_mha(input_Q, input_K, input_V, enc_inputs,
                        W_Q, W_K, W_V, W_fc,
                        n_heads=n_heads, d_k=d_k, d_v=d_v)

    assert out.shape == (B, S, d_model)
    assert jnp.allclose(out, ref, atol=2e-3, rtol=2e-3), \
        f"max abs err = {jnp.max(jnp.abs(out - ref))}"
    print("KERNEL_OK")
</pallas_src>

<mosaic_0001>
module attributes {stable_mosaic.version = 11 : i64} {
  func.func @mha_kernel(%arg0: i32, %arg1: i32, %arg2: memref<1x8x32xf32, #tpu.memory_space<vmem>>, %arg3: memref<1x8x32xf32, #tpu.memory_space<vmem>>, %arg4: memref<1x8x32xf32, #tpu.memory_space<vmem>>, %arg5: memref<1x8x32xf32, #tpu.memory_space<vmem>>, %arg6: memref<32x32xf32, #tpu.memory_space<vmem>>, %arg7: memref<32x32xf32, #tpu.memory_space<vmem>>, %arg8: memref<32x32xf32, #tpu.memory_space<vmem>>, %arg9: memref<32x32xf32, #tpu.memory_space<vmem>>, %arg10: memref<1x8x32xf32, #tpu.memory_space<vmem>>, %arg11: memref<4x8x8xf32, #tpu.memory_space<vmem>>, %arg12: memref<4x8x8xf32, #tpu.memory_space<vmem>>) attributes {dimension_semantics = [#tpu.dimension_semantics<parallel>, #tpu.dimension_semantics<arbitrary>], iteration_bounds = array<i64: 2, 1>, scalar_prefetch = 0 : i64, scratch_operands = 2 : i64, tpu.core_type = #tpu.core_type<tc>, window_params = [{transform_indices = @transform_0, window_bounds = array<i64: 1, 8, 32>}, {transform_indices = @transform_1, window_bounds = array<i64: 1, 8, 32>}, {transform_indices = @transform_2, window_bounds = array<i64: 1, 8, 32>}, {transform_indices = @transform_3, window_bounds = array<i64: 1, 8, 32>}, {pipeline_mode = #tpu.pipeline_mode<synchronous>, transform_indices = @transform_4, window_bounds = array<i64: 32, 32>}, {pipeline_mode = #tpu.pipeline_mode<synchronous>, transform_indices = @transform_5, window_bounds = array<i64: 32, 32>}, {pipeline_mode = #tpu.pipeline_mode<synchronous>, transform_indices = @transform_6, window_bounds = array<i64: 32, 32>}, {pipeline_mode = #tpu.pipeline_mode<synchronous>, transform_indices = @transform_7, window_bounds = array<i64: 32, 32>}, {transform_indices = @transform_8, window_bounds = array<i64: 1, 8, 32>}]} {
    %c0_i32 = arith.constant 0 : i32
    %0 = arith.cmpi eq, %arg1, %c0_i32 : i32
    %1 = arith.extui %0 : i1 to i32
    %c0_i32_0 = arith.constant 0 : i32
    %2 = arith.cmpi ne, %1, %c0_i32_0 : i32
    scf.if %2 {
      %c0_24 = arith.constant 0 : index
      %c0_25 = arith.constant 0 : index
      %c0_26 = arith.constant 0 : index
      %33 = vector.load %arg3[%c0_24, %c0_25, %c0_26] : memref<1x8x32xf32, #tpu.memory_space<vmem>>, vector<1x8x32xf32>
      %34 = vector.shape_cast %33 : vector<1x8x32xf32> to vector<8x32xf32>
      %c0_27 = arith.constant 0 : index
      %c0_28 = arith.constant 0 : index
      %c0_29 = arith.constant 0 : index
      %35 = vector.load %arg4[%c0_27, %c0_28, %c0_29] : memref<1x8x32xf32, #tpu.memory_space<vmem>>, vector<1x8x32xf32>
      %36 = vector.shape_cast %35 : vector<1x8x32xf32> to vector<8x32xf32>
      %c0_30 = arith.constant 0 : index
      %c0_31 = arith.constant 0 : index
      %37 = vector.load %arg7[%c0_30, %c0_31] : memref<32x32xf32, #tpu.memory_space<vmem>>, vector<32x32xf32>
      %cst_32 = arith.constant dense<0.000000e+00> : vector<8x32xf32>
      %38 = tpu.matmul %34, %37, %cst_32 {dimension_numbers = #tpu.dot_dimension_numbers<[1], [0], [0], [1], [0, 0, 1, 1], [], []>} : vector<8x32xf32>, vector<32x32xf32>, vector<8x32xf32> -> vector<8x32xf32>
      %c0_33 = arith.constant 0 : index
      %c0_34 = arith.constant 0 : index
      %39 = vector.load %arg8[%c0_33, %c0_34] : memref<32x32xf32, #tpu.memory_space<vmem>>, vector<32x32xf32>
      %cst_35 = arith.constant dense<0.000000e+00> : vector<8x32xf32>
      %40 = tpu.matmul %36, %39, %cst_35 {dimension_numbers = #tpu.dot_dimension_numbers<[1], [0], [0], [1], [0, 0, 1, 1], [], []>} : vector<8x32xf32>, vector<32x32xf32>, vector<8x32xf32> -> vector<8x32xf32>
      %41 = vector.shape_cast %38 : vector<8x32xf32> to vector<8x4x8xf32>
      %42 = tpu.transpose %41, [1, 0, 2] : vector<8x4x8xf32> -> vector<4x8x8xf32>
      %c0_36 = arith.constant 0 : index
      %c0_37 = arith.constant 0 : index
      %c0_38 = arith.constant 0 : index
      %43 = vector.load %arg11[%c0_36, %c0_37, %c0_38] : memref<4x8x8xf32, #tpu.memory_space<vmem>>, vector<4x8x8xf32>
      tpu.vector_store %arg11[%c0_36, %c0_37, %c0_38], %42 {strides = array<i32>} : memref<4x8x8xf32, #tpu.memory_space<vmem>>, vector<4x8x8xf32>,
      %44 = vector.shape_cast %40 : vector<8x32xf32> to vector<8x4x8xf32>
      %45 = tpu.transpose %44, [1, 0, 2] : vector<8x4x8xf32> -> vector<4x8x8xf32>
      %c0_39 = arith.constant 0 : index
      %c0_40 = arith.constant 0 : index
      %c0_41 = arith.constant 0 : index
      %46 = vector.load %arg12[%c0_39, %c0_40, %c0_41] : memref<4x8x8xf32, #tpu.memory_space<vmem>>, vector<4x8x8xf32>
      tpu.vector_store %arg12[%c0_39, %c0_40, %c0_41], %45 {strides = array<i32>} : memref<4x8x8xf32, #tpu.memory_space<vmem>>, vector<4x8x8xf32>,
    } else {
    }
    %c0 = arith.constant 0 : index
    %c0_1 = arith.constant 0 : index
    %c0_2 = arith.constant 0 : index
    %3 = vector.load %arg2[%c0, %c0_1, %c0_2] : memref<1x8x32xf32, #tpu.memory_space<vmem>>, vector<1x8x32xf32>
    %4 = vector.shape_cast %3 : vector<1x8x32xf32> to vector<8x32xf32>
    %c0_3 = arith.constant 0 : index
    %c0_4 = arith.constant 0 : index
    %5 = vector.load %arg6[%c0_3, %c0_4] : memref<32x32xf32, #tpu.memory_space<vmem>>, vector<32x32xf32>
    %cst = arith.constant dense<0.000000e+00> : vector<8x32xf32>
    %6 = tpu.matmul %4, %5, %cst {dimension_numbers = #tpu.dot_dimension_numbers<[1], [0], [0], [1], [0, 0, 1, 1], [], []>} : vector<8x32xf32>, vector<32x32xf32>, vector<8x32xf32> -> vector<8x32xf32>
    %7 = vector.shape_cast %6 : vector<8x32xf32> to vector<8x4x8xf32>
    %8 = tpu.transpose %7, [1, 0, 2] : vector<8x4x8xf32> -> vector<4x8x8xf32>
    %c0_5 = arith.constant 0 : index
    %c0_6 = arith.constant 0 : index
    %c0_7 = arith.constant 0 : index
    %9 = vector.load %arg11[%c0_5, %c0_6, %c0_7] : memref<4x8x8xf32, #tpu.memory_space<vmem>>, vector<4x8x8xf32>
    %c0_8 = arith.constant 0 : index
    %c0_9 = arith.constant 0 : index
    %c0_10 = arith.constant 0 : index
    %10 = vector.load %arg12[%c0_8, %c0_9, %c0_10] : memref<4x8x8xf32, #tpu.memory_space<vmem>>, vector<4x8x8xf32>
    %cst_11 = arith.constant dense<0.000000e+00> : vector<4x8x8xf32>
    %11 = tpu.matmul %8, %9, %cst_11 {dimension_numbers = #tpu.dot_dimension_numbers<[2], [2], [1], [1], [0, 0, 0, 1, 1, 1], [0], [0]>} : vector<4x8x8xf32>, vector<4x8x8xf32>, vector<4x8x8xf32> -> vector<4x8x8xf32>
    %cst_12 = arith.constant dense<0xFF800000> : vector<4x8xf32>
    %12 = vector.multi_reduction <maximumf>, %11, %cst_12 [2] : vector<4x8x8xf32> to vector<4x8xf32>
    %13 = vector.shape_cast %12 : vector<4x8xf32> to vector<4x8x1xf32>
    %14 = vector.broadcast %13 : vector<4x8x1xf32> to vector<4x8x8xf32>
    %15 = arith.subf %11, %14 : vector<4x8x8xf32>
    %16 = math.exp %15 : vector<4x8x8xf32>
    %cst_13 = arith.constant dense<0.000000e+00> : vector<4x8xf32>
    %17 = vector.multi_reduction <add>, %16, %cst_13 [2] : vector<4x8x8xf32> to vector<4x8xf32>
    %18 = vector.shape_cast %17 : vector<4x8xf32> to vector<4x8x1xf32>
    %cst_14 = arith.constant dense<0.000000e+00> : vector<4x8x8xf32>
    %19 = tpu.matmul %16, %10, %cst_14 {dimension_numbers = #tpu.dot_dimension_numbers<[2], [1], [1], [2], [0, 0, 0, 1, 1, 2], [0], [0]>} : vector<4x8x8xf32>, vector<4x8x8xf32>, vector<4x8x8xf32> -> vector<4x8x8xf32>
    %20 = tpu.reciprocal %18 : vector<4x8x1xf32> -> vector<4x8x1xf32>
    %21 = vector.broadcast %20 : vector<4x8x1xf32> to vector<4x8x8xf32>
    %22 = arith.mulf %19, %21 : vector<4x8x8xf32>
    %23 = tpu.transpose %22, [1, 0, 2] : vector<4x8x8xf32> -> vector<8x4x8xf32>
    %24 = vector.shape_cast %23 : vector<8x4x8xf32> to vector<8x32xf32>
    %c0_15 = arith.constant 0 : index
    %c0_16 = arith.constant 0 : index
    %25 = vector.load %arg9[%c0_15, %c0_16] : memref<32x32xf32, #tpu.memory_space<vmem>>, vector<32x32xf32>
    %cst_17 = arith.constant dense<0.000000e+00> : vector<8x32xf32>
    %26 = tpu.matmul %24, %25, %cst_17 {dimension_numbers = #tpu.dot_dimension_numbers<[1], [0], [0], [1], [0, 0, 1, 1], [], []>} : vector<8x32xf32>, vector<32x32xf32>, vector<8x32xf32> -> vector<8x32xf32>
    %c0_18 = arith.constant 0 : index
    %c0_19 = arith.constant 0 : index
    %c0_20 = arith.constant 0 : index
    %27 = vector.load %arg5[%c0_18, %c0_19, %c0_20] : memref<1x8x32xf32, #tpu.memory_space<vmem>>, vector<1x8x32xf32>
    %28 = vector.shape_cast %27 : vector<1x8x32xf32> to vector<8x32xf32>
    %29 = arith.addf %26, %28 : vector<8x32xf32>
    %c0_21 = arith.constant 0 : index
    %c0_22 = arith.constant 0 : index
    %c0_23 = arith.constant 0 : index
    %30 = vector.load %arg10[%c0_21, %c0_22, %c0_23] : memref<1x8x32xf32, #tpu.memory_space<vmem>>, vector<1x8x32xf32>
    %31 = vector.shape_cast %30 : vector<1x8x32xf32> to vector<8x32xf32>
    %32 = vector.shape_cast %29 : vector<8x32xf32> to vector<1x8x32xf32>
    tpu.vector_store %arg10[%c0_21, %c0_22, %c0_23], %32 {strides = array<i32>} : memref<1x8x32xf32, #tpu.memory_space<vmem>>, vector<1x8x32xf32>,
    return
  }
  func.func @transform_0(%arg0: i32, %arg1: i32) -> (i32, i32, i32) {
    %c0_i32 = arith.constant 0 : i32
    %c0_i32_0 = arith.constant 0 : i32
    return %arg0, %arg1, %c0_i32 : i32, i32, i32
  }
  func.func @transform_1(%arg0: i32, %arg1: i32) -> (i32, i32, i32) {
    %c0_i32 = arith.constant 0 : i32
    %c0_i32_0 = arith.constant 0 : i32
    %c0_i32_1 = arith.constant 0 : i32
    return %arg0, %c0_i32, %c0_i32_0 : i32, i32, i32
  }
  func.func @transform_2(%arg0: i32, %arg1: i32) -> (i32, i32, i32) {
    %c0_i32 = arith.constant 0 : i32
    %c0_i32_0 = arith.constant 0 : i32
    %c0_i32_1 = arith.constant 0 : i32
    return %arg0, %c0_i32, %c0_i32_0 : i32, i32, i32
  }
  func.func @transform_3(%arg0: i32, %arg1: i32) -> (i32, i32, i32) {
    %c0_i32 = arith.constant 0 : i32
    %c0_i32_0 = arith.constant 0 : i32
    return %arg0, %arg1, %c0_i32 : i32, i32, i32
  }
  func.func @transform_4(%arg0: i32, %arg1: i32) -> (i32, i32) {
    %c0_i32 = arith.constant 0 : i32
    %c0_i32_0 = arith.constant 0 : i32
    %c0_i32_1 = arith.constant 0 : i32
    return %c0_i32, %c0_i32_0 : i32, i32
  }
  func.func @transform_5(%arg0: i32, %arg1: i32) -> (i32, i32) {
    %c0_i32 = arith.constant 0 : i32
    %c0_i32_0 = arith.constant 0 : i32
    %c0_i32_1 = arith.constant 0 : i32
    return %c0_i32, %c0_i32_0 : i32, i32
  }
  func.func @transform_6(%arg0: i32, %arg1: i32) -> (i32, i32) {
    %c0_i32 = arith.constant 0 : i32
    %c0_i32_0 = arith.constant 0 : i32
    %c0_i32_1 = arith.constant 0 : i32
    return %c0_i32, %c0_i32_0 : i32, i32
  }
  func.func @transform_7(%arg0: i32, %arg1: i32) -> (i32, i32) {
    %c0_i32 = arith.constant 0 : i32
    %c0_i32_0 = arith.constant 0 : i32
    %c0_i32_1 = arith.constant 0 : i32
    return %c0_i32, %c0_i32_0 : i32, i32
  }
  func.func @transform_8(%arg0: i32, %arg1: i32) -> (i32, i32, i32) {
    %c0_i32 = arith.constant 0 : i32
    %c0_i32_0 = arith.constant 0 : i32
    return %arg0, %arg1, %c0_i32 : i32, i32, i32
  }
}

</mosaic_0001>

<bundles_post_ra>
// kernel: tpu_custom_call.1
= control target key start
LH: loop header
LB: loop body
LE: loop exit
PB: predicated region body
PF: predicated region fallthrough
CT: control target
= control target key end

     0   :  { %s3422_s0 = inlined_call_operand.hbm [shape: f32[2,8,32], index: 0, kind: input, shape index: {}]   ;;  %s3423_s1 = inlined_call_operand.hbm [shape: f32[2,8,32], index: 1, kind: input, shape index: {}]   ;;  %s3424_s2 = inlined_call_operand.hbm [shape: f32[2,8,32], index: 2, kind: input, shape index: {}]   ;;  %s3425_s3 = inlined_call_operand.hbm [shape: f32[2,8,32], index: 3, kind: input, shape index: {}]   ;;  %s3426_s4 = inlined_call_operand.hbm [shape: f32[32,32], index: 4, kind: input, shape index: {}]   ;;  %s3427_s5 = inlined_call_operand.hbm [shape: f32[32,32], index: 5, kind: input, shape index: {}]   ;;  %s3428_s6 = inlined_call_operand.hbm [shape: f32[32,32], index: 6, kind: input, shape index: {}]   ;;  %s3429_s7 = inlined_call_operand.hbm [shape: f32[32,32], index: 7, kind: input, shape index: {}]   ;;  %s3430_s8 = inlined_call_operand.hbm [shape: f32[2,8,32], index: 8, kind: output, shape index: {}]  }
   0x1   :  { %3445 = sst [smem:[#allocation31_spill]] %s3423_s1 }
   0x2   :  { %3446 = sst [smem:[#allocation32_spill]] %s3426_s4 }
   0x3   :  { %3447 = sst [smem:[#allocation33_spill]] %s3427_s5 }
   0x4   :  { %3448 = sst [smem:[#allocation34_spill]] %s3428_s6 }
   0x5   :  { %13 = vsyncpa [#allocation5], 0 }
   0x6   :  { %15 = vsyncpa [#allocation5 + $0x1], 0 }
   0x7   :  { %16 = vsyncpa [#allocation8], 0 }
   0x8   :  { %18 = vsyncpa [#allocation8 + $0x1], 0 }
   0x9   :  { %19 = vsyncpa [#allocation11], 0 }
   0xa   :  { %21 = vsyncpa [#allocation11 + $0x1], 0 }
   0xb   :  { %22 = vsyncpa [#allocation14], 0 }
   0xc   :  { %23 = vsyncpa [#allocation17], 0 }
   0xd   :  { %24 = vsyncpa [#allocation6], 0 }
   0xe   :  { %26 = vsyncpa [#allocation6 + $0x1], 0  ;;  %s2979_s27 = smov 0   ;;  %s2981_s28 = smov 0  }
   0xf   :  { %s2983_s29 = smov 0   ;;  %s2985_s30 = smov 0  }
  0x10   :  { %s2987_s9 = smov 0   ;;  %s2989_s10 = smov 0  }
  0x11 LB: > { %3449 = sst [smem:[#allocation26_spill]] %s2891_s27  ;;  %s3010_s11 = sadd.s32 4294967295, %s2911_s10   ;;  %s2911_s10 = sphi %s2989_s10, %s32_s10   ;;  %s2907_s9 = sphi %s2987_s9, %s3486_s9   ;;  %s2903_s30 = sphi %s2985_s30, %s3485_s30   ;;  %s2899_s29 = sphi %s2983_s29, %s3489_s29   ;;  %s2895_s28 = sphi %s2981_s28, %s3488_s28   ;;  %s2891_s27 = sphi %s2979_s27, %s3487_s27  }
  0x12   : > { %3450 = sst [smem:[#allocation27_spill]] %s2907_s9  ;;  %s2276_s12 = sadd.s32 4294967294, %s2911_s10  }
  0x13   : > { %p66_p0 = scmp.ne.s32.totalorder %s2895_s28, %s2891_s27  ;;  %p3431_p1 = scmp.eq.s32.totalorder %s3010_s11, 0 }
  0x14   : > { %p256_p2 = scmp.eq.s32.totalorder %s3010_s11, 1  ;;  %p262_p3 = scmp.eq.s32.totalorder %s2276_s12, 1 }
  0x15   : > { %p3019_p4 = por %p3431_p1, %p66_p0  ;;  %p2277_p5 = scmp.ge.s32.totalorder %s2911_s10, 1 }
  0x16   : > { %p3024_p6 = por %p262_p3, %p66_p0  ;;  %p269_p7 = scmp.lt.s32.totalorder %s2911_s10, 3 }
  0x17   : > { %s2913_s16 = smov [#allocation12]   ;;  %s2914_s19 = smov [#allocation13]  }
  0x18   : > { %s3452_s14 = scalar_select %p3024_p6, 1, 0 }
  0x19   : > { %p3029_p8 = pnand %p2277_p5, %p269_p7  ;;  %s281_s17 = sshll.u32 %s2913_s16, 4  ;;  %s282_s17 = int_to_ptr.vmem [resolvable:$true] %s281_s17 }
  0x1a   : > { %3453 = sst [smem:[#allocation28_spill]] %s3452_s14  ;;  %s294_s20 = sshll.u32 %s2914_s19, 4  ;;  %s295_s20 = int_to_ptr.vmem [resolvable:$true] %s294_s20 }
  0x1b   : > { %p2475_p9 = pneg %p3029_p8  ;;  %s2606_s21 = scalar_lea.vmem %s282_s17, 512 }
  0x1c   : > { %p2607_p13 = scmp.ne.s32.totalorder %s282_s17, %s2606_s21  ;;  %p2614_p5 = scmp.lt.s32.totalorder %s282_s17, %s282_s17 }
  0x1d   : > { %p3038_p11 = pnand %p2475_p9, %p3431_p1  ;;  %p2615_p7 = scmp.lt.s32.totalorder %s2606_s21, %s2606_s21 }
  0x1f   : > { %p3440_p12 = pneg %p3038_p11  ;;  %p2616_p10 = por %p2615_p7, %p2614_p5 }
  0x21   : > { %p2609_p0 = pnand %p2607_p13, %p3440_p12 }
  0x23   : > { %p2610_p3 = pneg %p2609_p0 }
  0x25   : > { %p2617_p9 = pnand %p2616_p10, %p2610_p3 }
  0x27   : > { %2620 = shalt.err (!%p2617_p9)
}
  0x28   : > { %s3432_s22 = smov 128   ;;  %s3434_s23 = smov 8  }
  0x29   : > { %s3456_s4 = sld [smem:[#allocation32_spill]]  ;;  %s2632_s26 = scalar_lea.vmem %s295_s20, 512 }
  0x2a   : > { %p2633_p13 = scmp.ne.s32.totalorder %s295_s20, %s2632_s26  ;;  %p2640_p10 = scmp.lt.s32.totalorder %s295_s20, %s295_s20 }
  0x2b   : > { %p2641_p3 = scmp.lt.s32.totalorder %s2632_s26, %s2632_s26 }
  0x2c   : > { %p2635_p0 = pnand %p2633_p13, %p3440_p12 }
  0x2d   : > { %p2642_p7 = por %p2641_p3, %p2640_p10 }
  0x2e   : > { %p2636_p5 = pneg %p2635_p0 }
  0x2f   : > { %2478 = dma.hbm_to_vmem [thread:$0]  (!%p3038_p11), %s3456_s4, 512, %s282_s17, [#allocation11], %s3432_s22, %s3432_s22, %s3434_s23  }
  0x30   : > { %p2643_p9 = pnand %p2642_p7, %p2636_p5 }
  0x32   : > { %2646 = shalt.err (!%p2643_p9)
}
  0x33   : > { %s3457_s5 = sld [smem:[#allocation33_spill]]  ;;  %s44_s17 = sadd.s32 1, %s2907_s9 }
  0x34   : > { %s53_s19 = sadd.s32 1, %s2899_s29  ;;  %p46_p13 = scmp.ge.s32.totalorder %s44_s17, 2 }
  0x35   : > { %p60_p0 = scmp.ne.s32.totalorder %s2899_s29, %s2895_s28  ;;  %p61_p5 = scmp.eq.s32.totalorder %s2911_s10, 0 }
  0x36   : > { %p2509_p10 = scmp.lt.s32.totalorder %s2911_s10, 2  ;;  %s3491_s17 = smov (%p46_p13, %s44_s17), 0 }
  0x37   : > { %3458 = sst [smem:[#allocation29_spill]] %s3491_s17  ;;  %p62_p3 = por %p61_p5, %p60_p0 }
  0x38   : > { %p3076_p7 = por %p256_p2, %p60_p0  ;;  %s48_s24 = ssub.s32 %s2907_s9, %s3491_s17 }
  0x39   : > { %2481 = dma.hbm_to_vmem [thread:$0]  (!%p3038_p11), %s3457_s5, 512, %s295_s20, [#allocation14], %s3432_s22, %s3432_s22, %s3434_s23  }
  0x3a   : > { %s3459_s21 = scalar_select %p3076_p7, 1, 0 }
  0x3b   : > { %s3436_s20 = sand.u32 1, %s2899_s29   ;;  %p51_p9 = scmp.eq.s32.totalorder %s48_s24, 0 }
  0x3c   : > { %s3085_s25 = sshll.u32 %s3436_s20, 3  ;;  %s3088_s26 = sshll.u32 %s2907_s9, 7 }
  0x3d   : > { %p3090_p1 = pnand %p2509_p10, %p62_p3  ;;  %s3441_s22 = sand.u32 1, %s2911_s10  }
  0x3e   : > { %s3095_s16 = scalar_select %p51_p9, %s2899_s29, %s53_s19  }
  0x3f   : > { %s3462_s1 = sld [smem:[#allocation31_spill]]  ;;  %s357_s5 = scalar_lea.vmem [#allocation7], %s3085_s25 }
  0x40   : > { %3461 = sst [smem:[#allocation30_spill]] %s3095_s16  ;;  %s364_s20 = sshll.u32 %s357_s5, 4  ;;  %s365_s20 = int_to_ptr.vmem [resolvable:$true] %s364_s20 }
  0x41   : > { %s3105_s17 = scalar_lea.sflag [#allocation8], %s3441_s22  ;;  %p3442_p2 = pneg %p3090_p1 }
  0x42   : > { %s2660_s9 = scalar_lea.vmem %s365_s20, 128  ;;  %s2917_s19 = smov [#allocation7]  }
  0x43   : > { %p2661_p13 = scmp.ne.s32.totalorder %s365_s20, %s2660_s9  ;;  %s2665_s16 = sshll.u32 %s2917_s19, 4  ;;  %s2666_s16 = int_to_ptr.vmem [resolvable:$false] %s2665_s16 }
  0x44   : > { %s2667_s14 = scalar_lea.vmem %s2666_s16, 256  ;;  %p2668_p10 = scmp.lt.s32.totalorder %s365_s20, %s2666_s16 }
  0x45   : > { %s362_s24 = scalar_lea.hbm %s3462_s1, %s3088_s26  ;;  %p2663_p0 = pnand %p2661_p13, %p3442_p2 }
  0x46   : > { %p2669_p3 = scmp.lt.s32.totalorder %s2667_s14, %s2660_s9 }
  0x47   : > { %p2664_p5 = pneg %p2663_p0 }
  0x48   : > { %p2670_p9 = por %p2669_p3, %p2668_p10 }
  0x4a   : > { %p2671_p12 = pnand %p2670_p9, %p2664_p5 }
  0x4c   : > { %2674 = shalt.err (!%p2671_p12)
}
  0x4d   : > { %2494 = dma.hbm_to_vmem [thread:$0]  (!%p3090_p1), %s362_s24, 128, %s365_s20, %s3105_s17  }
  0x4e   : > { %s2918_s4 = smov [#allocation15]   ;;  %s2919_s23 = smov [#allocation16]  }
  0x4f   : > { %s307_s5 = sshll.u32 %s2918_s4, 4  ;;  %s320_s22 = sshll.u32 %s2919_s23, 4  ;;  %s308_s5 = int_to_ptr.vmem [resolvable:$true] %s307_s5  ;;  %s321_s22 = int_to_ptr.vmem [resolvable:$true] %s320_s22 }
  0x50   : > { %s2686_s1 = scalar_lea.vmem %s308_s5, 512  ;;  %p3463_p0 = pneg %p3038_p11 }
  0x51   : > { %p2687_p13 = scmp.ne.s32.totalorder %s308_s5, %s2686_s1  ;;  %p2694_p10 = scmp.lt.s32.totalorder %s308_s5, %s308_s5 }
  0x52   : > { %p2695_p5 = scmp.lt.s32.totalorder %s2686_s1, %s2686_s1 }
  0x53   : > { %p2689_p2 = pnand %p2687_p13, %p3463_p0 }
  0x54   : > { %p2696_p12 = por %p2695_p5, %p2694_p10 }
  0x55   : > { %p2690_p6 = pneg %p2689_p2 }
  0x57   : > { %p2697_p3 = pnand %p2696_p12, %p2690_p6 }
  0x59   : > { %2700 = shalt.err (!%p2697_p3)
}
  0x5a   : > { %s3464_s9 = smov 8   ;;  %s3465_s14 = smov 128  }
  0x5b   : > { %s3466_s6 = sld [smem:[#allocation34_spill]]  ;;  %s2712_s24 = scalar_lea.vmem %s321_s22, 512 }
  0x5c   : > { %p2713_p9 = scmp.ne.s32.totalorder %s321_s22, %s2712_s24  ;;  %p3467_p13 = pmov %p3463_p0 }
  0x5d   : > { %p2720_p7 = scmp.lt.s32.totalorder %s321_s22, %s321_s22  ;;  %p2721_p10 = scmp.lt.s32.totalorder %s2712_s24, %s2712_s24 }
  0x5e   : > { %p2715_p2 = pnand %p2713_p9, %p3467_p13 }
  0x5f   : > { %p2722_p6 = por %p2721_p10, %p2720_p7 }
  0x60   : > { %p2716_p0 = pneg %p2715_p2 }
  0x61   : > { %2484 = dma.hbm_to_vmem [thread:$0]  (!%p3038_p11), %s3466_s6, 512, %s308_s5, [#allocation14], %s3465_s14, %s3465_s14, %s3464_s9  }
  0x62   : > { %p2723_p5 = pnand %p2722_p6, %p2716_p0 }
  0x64   : > { %2726 = shalt.err (!%p2723_p5)
}
  0x65   : > { %2487 = dma.hbm_to_vmem [thread:$0]  (!%p3038_p11), %s3429_s7, 512, %s321_s22, [#allocation17], %s3465_s14, %s3465_s14, %s3464_s9  }
  0x66   : > { %s344_s23 = scalar_lea.hbm %s3422_s0, %s3088_s26  ;;  %s338_s20 = scalar_lea.vmem [#allocation4], %s3085_s25 }
  0x67   : > { %s346_s16 = sshll.u32 %s338_s20, 4  ;;  %s3468_s24 = sand.u32 1, %s2899_s29   ;;  %s347_s16 = int_to_ptr.vmem [resolvable:$true] %s346_s16 }
  0x68   : > { %s335_s18 = scalar_lea.sflag [#allocation5], %s3468_s24  ;;  %s2740_s6 = scalar_lea.vmem %s347_s16, 128 }
  0x69   : > { %p2741_p7 = scmp.ne.s32.totalorder %s347_s16, %s2740_s6  ;;  %p3469_p12 = pneg %p3090_p1 }
  0x6a   : > { %s2920_s1 = smov [#allocation4]  }
  0x6b   : > { %p2743_p3 = pnand %p2741_p7, %p3469_p12  ;;  %s2745_s19 = sshll.u32 %s2920_s1, 4  ;;  %s2746_s19 = int_to_ptr.vmem [resolvable:$false] %s2745_s19 }
  0x6c   : > { %s2747_s27 = scalar_lea.vmem %s2746_s19, 256  ;;  %p2748_p11 = scmp.lt.s32.totalorder %s347_s16, %s2746_s19 }
  0x6d   : > { %p2744_p9 = pneg %p2743_p3  ;;  %p2749_p13 = scmp.lt.s32.totalorder %s2747_s27, %s2740_s6 }
  0x6f   : > { %p2750_p2 = por %p2749_p13, %p2748_p11 }
  0x71   : > { %p2751_p0 = pnand %p2750_p2, %p2744_p9 }
  0x73   : > { %2754 = shalt.err (!%p2751_p0)
}
  0x74   : > { %2491 = dma.hbm_to_vmem [thread:$0]  (!%p3090_p1), %s344_s23, 128, %s347_s16, %s335_s18  }
  0x75   : > { %s380_s14 = scalar_lea.hbm %s3424_s2, %s3088_s26  ;;  %s375_s4 = scalar_lea.vmem [#allocation9], %s3085_s25 }
  0x76   : > { %s382_s5 = sshll.u32 %s375_s4, 4  ;;  %p3470_p6 = pmov %p3469_p12  ;;  %s383_s5 = int_to_ptr.vmem [resolvable:$true] %s382_s5 }
  0x77   : > { %s2768_s20 = scalar_lea.vmem %s383_s5, 128  ;;  %s2921_s6 = smov [#allocation9]  }
  0x78   : > { %p2769_p10 = scmp.ne.s32.totalorder %s383_s5, %s2768_s20  ;;  %s2773_s27 = sshll.u32 %s2921_s6, 4  ;;  %s2774_s27 = int_to_ptr.vmem [resolvable:$false] %s2773_s27 }
  0x79   : > { %s2775_s24 = scalar_lea.vmem %s2774_s27, 256  ;;  %p2776_p12 = scmp.lt.s32.totalorder %s383_s5, %s2774_s27 }
  0x7a   : > { %p2771_p5 = pnand %p2769_p10, %p3470_p6  ;;  %p2777_p3 = scmp.lt.s32.totalorder %s2775_s24, %s2768_s20 }
  0x7c   : > { %p2772_p7 = pneg %p2771_p5  ;;  %p2778_p9 = por %p2777_p3, %p2776_p12 }
  0x7e   : > { %p2779_p11 = pnand %p2778_p9, %p2772_p7 }
  0x80   : > { %2782 = shalt.err (!%p2779_p11)
}
  0x81   : > { %2497 = dma.hbm_to_vmem [thread:$0]  (!%p3090_p1), %s380_s14, 128, %s383_s5, %s3105_s17  }
  0x82   : > { %s399_s18 = scalar_lea.hbm %s3425_s3, %s3088_s26  ;;  %s393_s1 = scalar_lea.vmem [#allocation10], %s3085_s25 }
  0x83   : > { %s401_s19 = sshll.u32 %s393_s1, 4  ;;  %s3471_s22 = sand.u32 1, %s2911_s10   ;;  %s402_s19 = int_to_ptr.vmem [resolvable:$true] %s401_s19 }
  0x84   : > { %s390_s9 = scalar_lea.sflag [#allocation11], %s3471_s22  ;;  %s2796_s4 = scalar_lea.vmem %s402_s19, 128 }
  0x85   : > { %p2797_p13 = scmp.ne.s32.totalorder %s402_s19, %s2796_s4  ;;  %p3472_p2 = pmov %p3470_p6 }
  0x86   : > { %s2922_s20 = smov [#allocation10]  }
  0x87   : > { %p2799_p0 = pnand %p2797_p13, %p3472_p2  ;;  %s2801_s6 = sshll.u32 %s2922_s20, 4  ;;  %s2802_s6 = int_to_ptr.vmem [resolvable:$false] %s2801_s6 }
  0x88   : > { %s2803_s27 = scalar_lea.vmem %s2802_s6, 256  ;;  %p2804_p6 = scmp.lt.s32.totalorder %s402_s19, %s2802_s6 }
  0x89   : > { %p2800_p10 = pneg %p2799_p0  ;;  %p2805_p5 = scmp.lt.s32.totalorder %s2803_s27, %s2796_s4 }
  0x8b   : > { %p2806_p7 = por %p2805_p5, %p2804_p6 }
  0x8d   : > { %p2807_p12 = pnand %p2806_p7, %p2800_p10 }
  0x8f   : > { %2810 = shalt.err (!%p2807_p12)
}
  0x90   : > { %2500 = dma.hbm_to_vmem [thread:$0]  (!%p3090_p1), %s399_s18, 128, %s402_s19, %s390_s9  }
  0x91   : > { %410 = sbr.rel (%p3029_p8) target bundleno = 1420 (0x58c), region = 52  ;;  %s3175_s17 = sand.u32 (!%p3029_p8), 1, %s2895_s28  }
  0x92   : > { %s3178_s25 = sshll.u32 (!%p3029_p8), %s3175_s17, 3  ;;  %s413_s26 = scalar_lea.sflag (!%p3029_p8), [#allocation5], %s3175_s17 }
  0x93   : > { %s416_s14 = scalar_lea.vmem (!%p3029_p8), [#allocation4], %s3178_s25 }
  0x96   : > { %2862 = dma.done.wait (%p3019_p4), %s413_s26, 128  }
  0x97   : > { %2864 = vsyncadd (%p3019_p4), %s413_s26, 4294967168  ;;  %s421_s15 = sand.u32 1, %s3010_s11   ;;  %s425_s5 = scalar_lea.vmem [#allocation7], %s3178_s25 }
  0x98   : > { %s422_s12 = scalar_lea.sflag [#allocation8], %s421_s15 }
  0x99   : > { %2866 = dma.done.wait (%p3019_p4), %s422_s12, 256  }
  0x9a   : > { %2868 = vsyncadd (%p3019_p4), %s422_s12, 4294967040  ;;  %s434_s24 = scalar_lea.vmem [#allocation9], %s3178_s25  ;;  %s440_s23 = scalar_lea.sflag [#allocation11], %s421_s15 }
  0x9b   : > { %s443_s16 = scalar_lea.vmem [#allocation10], %s3178_s25 }
  0x9c   : > { %2870 = dma.done.wait (%p3019_p4), %s440_s23, 128  }
  0x9d   : > { %2872 = vsyncadd (%p3019_p4), %s440_s23, 4294967168  ;;  %p3473_p1 = scmp.eq.s32.totalorder %s3010_s11, 0 }
  0x9f   : > { %2874 = dma.done.wait (%p3473_p1), [#allocation11], 512   ;;  %p3474_p8 = pmov %p3473_p1 }
  0xa0   : > { %p3475_p3 = pmov %p3473_p1 }
  0xa1   : > { %2876 = vsyncadd (%p3474_p8), [#allocation11], 4294966784 }
  0xa2   : > { %2878 = dma.done.wait (%p3475_p3), [#allocation14], 1024   ;;  %p3476_p9 = pmov %p3473_p1 }
  0xa3   : > { %p3477_p11 = pmov %p3473_p1 }
  0xa4   : > { %2880 = vsyncadd (%p3476_p9), [#allocation14], 4294966272 }
  0xa5   : > { %2882 = dma.done.wait (%p3477_p11), [#allocation17], 512   ;;  %p3478_p13 = pmov %p3473_p1 }
  0xa6   : > { %v2923_v0 = vmov 0.0   ;;  %vm2924_vm0 = vmmov 0   ;;  %v516_v1 = vld [vmem:[#allocation13 + $0x18] sm:$0xff]  ;;  %v515_v2 = vld [vmem:[#allocation13 + $0x10] sm:$0xff]  ;;  %v514_v3 = vld [vmem:[#allocation13 + $0x8] sm:$0xff]  ;;  %vm517_vm1 = vcmask 261120   ;;  %v683_v24 = vlaneseq }
  0xa7   : > { %2884 = vsyncadd (%p3478_p13), [#allocation17], 4294966784  ;;  %2365 = vmatprep.subr.mxu0 %v2923_v0  ;;  %2373 = vmatprep.mubr.msk.f32.mxu0 %vm2924_vm0, %v2923_v0  ;;  %v594_v4 = vld [vmem:[#allocation15 + $0x18] sm:$0xff]  ;;  %v593_v5 = vld [vmem:[#allocation15 + $0x10] sm:$0xff]  ;;  %s2925_s11 = smov 104   ;;  %s2926_s13 = smov 120  }
  0xa8   : > { %2376 = vmatprep.subr.mxu1 %v2923_v0  ;;  %2384 = vmatprep.mubr.msk.f32.mxu1 %vm2924_vm0, %v2923_v0  ;;  %v513_v6 = vld [vmem:[#allocation13] sm:$0xff]  ;;  %v511_v7 = vld [vmem:[%s425_s5] sm:$0xff]  ;;  %v971_v10 = vld [vmem:[#allocation12 + $0x8] sm:$0xff]  ;;  %s2927_s18 = smov 112   ;;  %v2928_v22 = vmov 1983009808  }
  0xa9   : > { %2366 = vmatpush3.msra.mxu0 %v516_v1  ;;  %2377 = vmatpush3.msra.mxu1 %v594_v4  ;;  %v973_v8 = vld [vmem:[#allocation12 + $0x18] sm:$0xff]  ;;  %v972_v9 = vld [vmem:[#allocation12 + $0x10] sm:$0xff]  ;;  %v970_v11 = vld [vmem:[#allocation12] sm:$0xff]  ;;  %v681_v23 = vunpack.c.l.s4 %v2928_v22  ;;  %v2929_v25 = vmov 1934713408   ;;  %v684_v28 = vshrl.u32 %v683_v24, 7 }
  0xaa   : > { %2367 = vmatprep.subr.mxu0 %v2923_v0  ;;  %2378 = vmatprep.subr.mxu1 %v2923_v0  ;;  %v969_v12 = vld [vmem:[%s416_s14] sm:$0xff]  ;;  %v713_v26 = vunpack.c.l.s4 %v2929_v25  ;;  %vm814_vm2 = vcmask 64512   ;;  %s2930_s1 = smov 16   ;;  %s2931_s19 = smov 8   ;;  %vm1992_vm3 = vcmask 130048   ;;  %vm1994_vm4 = vcmask 195584  }
  0xab   : > { %2368 = vmatpush3.msra.mxu0 %v515_v2  ;;  %2379 = vmatpush3.msra.mxu1 %v593_v5  ;;  %v592_v13 = vld [vmem:[#allocation15 + $0x8] sm:$0xff]  ;;  %v591_v14 = vld [vmem:[#allocation15] sm:$0xff]  ;;  %v682_v27 = vunpack.c.0.s8 %v681_v23  ;;  %s2932_s22 = smov 24   ;;  %s2326_s9 = sshll.u32 %s2903_s30, 7 }
  0xac   : > { %2369 = vmatprep.subr.mxu0 %v2923_v0  ;;  %2380 = vmatprep.subr.mxu1 %v2923_v0  ;;  %v512_v15 = vld [vmem:[%s434_s24] sm:$0xff]  ;;  %v714_v31 = vunpack.c.0.s8 %v713_v26  ;;  %s506_s4 = scalar_lea.vmem [#allocation18], %s3178_s25  ;;  %s3379_s26 = scalar_lea.hbm %s3430_s8, %s2326_s9 }
  0xad   : > { %2370 = vmatpush3.msra.mxu0 %v514_v3  ;;  %2381 = vmatpush3.msra.mxu1 %v592_v13  ;;  %v3248_v32 = vsub.s32 %v682_v27, %v684_v28  ;;  %s2090_s20 = sshll.u32 %s506_s4, 4  ;;  %s2076_s14 = scalar_lea.sflag [#allocation6], %s3175_s17  ;;  %s2091_s20 = int_to_ptr.vmem [resolvable:$true] %s2090_s20 }
  0xae   : > { %2371 = vmatprep.subr.mxu0 %v2923_v0  ;;  %2382 = vmatprep.subr.mxu1 %v2923_v0  ;;  %v3250_v38 = vsub.s32 %v714_v31, %v684_v28  ;;  %s2811_s15 = scalar_lea.vmem %s2091_s20, 128  ;;  %p3479_p2 = scmp.ne.s32.totalorder %s3459_s21, 0 }
  0xaf   : > { %2372 = vmatpush3.msra.mxu0 %v513_v6  ;;  %2383 = vmatpush3.msra.mxu1 %v591_v14  ;;  %p2812_p4 = scmp.ne.s32.totalorder %s2091_s20, %s2811_s15  ;;  %s2933_s30 = smov [#allocation18]  }
  0xb0   : > { %2374 = vmatmul.mubr.msk.f32.vlgmr.msra.gmra.mxu0 %vm517_vm1, %v511_v7  ;;  %2387 = vmatprep.subr.mxu0 %v2923_v0  ;;  %s2815_s25 = sshll.u32 %s2933_s30, 4  ;;  %s2816_s25 = int_to_ptr.vmem [resolvable:$false] %s2815_s25 }
  0xb1   : > { %2388 = vmatpush3.msra.mxu0 %v973_v8  ;;  %2395 = vmatprep.mubr.msk.f32.mxu0 %vm2924_vm0, %v2923_v0  ;;  %p2813_p0 = pnand %p2812_p4, %p3479_p2  ;;  %s2817_s12 = scalar_lea.vmem %s2816_s25, 256 }
  0xb2   : > { %2389 = vmatprep.subr.mxu0 %v2923_v0  ;;  %2385 = vmatmul.mubr.msk.f32.vlgmr.msra.gmra.mxu1 %vm517_vm1, %v512_v15  ;;  %p2818_p6 = scmp.lt.s32.totalorder %s2091_s20, %s2816_s25  ;;  %p2819_p5 = scmp.lt.s32.totalorder %s2817_s12, %s2811_s15 }
  0xb3   : > { %2390 = vmatpush3.msra.mxu0 %v972_v9  ;;  %2398 = vmatprep.subr.mxu1 %v2923_v0  ;;  %p2814_p10 = pneg %p2813_p0 }
  0xb4   : > { %2391 = vmatprep.subr.mxu0 %v2923_v0  ;;  %2400 = vmatprep.mubr.msk.f32.mxu1 %vm2924_vm0, %v2923_v0  ;;  %p2820_p7 = por %p2819_p5, %p2818_p6 }
  0xb5   : > { %2392 = vmatpush3.msra.mxu0 %v971_v10 }
  0xb6   : > { %2393 = vmatprep.subr.mxu0 %v2923_v0  ;;  %p2821_p12 = pnand %p2820_p7, %p2814_p10 }
  0xb7   : > { %2394 = vmatpush3.msra.mxu0 %v970_v11 }
  0xb8   : > { %2396 = vmatmul.mubr.msk.f32.vlgmr.msra.gmra.mxu0 %vm517_vm1, %v969_v12  ;;  %2418 = vmatprep.subr.mxu0 %v2923_v0 }
  0xb9   : > { %2420 = vmatprep.mubr.msk.f32.mxu0 %vm2924_vm0, %v2923_v0 }
 0x170   : > { %v587_v16 = vpop.f32.mrf.mxu0 }
 0x171   : > { %675 = vrot.lane.b32.xlu1 %v587_v16, %s2925_s11  ;;  %669 = vrot.lane.b32.xlu0 %v587_v16, %s2926_s13 }
 0x172   : > { %v2375_v17 = vpop.f32.mrf.mxu0  ;;  %v3243_v20 = vpop.f32.mrf.mxu1 }
 0x174   : > { %v2386_v21 = vpop.f32.mrf.mxu1 }
 0x175   : > { %672 = vrot.lane.b32.xlu0 %v587_v16, %s2927_s18 }
 0x178   : > { %v1044_v18 = vpop.f32.mrf.mxu0 }
 0x179   : > { %1052 = vrot.lane.b32.xlu0 %v1044_v18, %s2927_s18  ;;  %1049 = vrot.lane.b32.xlu1 %v1044_v18, %s2926_s13 }
 0x17a   : > { %v2397_v19 = vpop.f32.mrf.mxu0 }
 0x17d   : > { %1055 = vrot.lane.b32.xlu1 %v1044_v18, %s2925_s11  ;;  %820 = vrot.lane.b32.xlu0 %v3243_v20, %s2926_s13 }
 0x181   : > { %823 = vrot.lane.b32.xlu1 %v3243_v20, %s2927_s18  ;;  %826 = vrot.lane.b32.xlu0 %v3243_v20, %s2925_s11 }
 0x1e3   : > { %v676_v29 = vpop.permute.xlu1 %675  ;;  %v670_v30 = vpop.permute.xlu0 %669 }
 0x1e4   : > { %v694_v33 = vcombine.low %v670_v30, %v676_v29  ;;  %v695_v34 = vcombine.high %v670_v30, %v676_v29 }
 0x1e6   : > { %v702_v39 = vrot.slane %v694_v33, %v3248_v32  ;;  %v709_v40 = vrot.slane %v695_v34, %v3248_v32 }
 0x1e7   : > { %v673_v35 = vpop.permute.xlu0 %672 }
 0x1e8   : > { %v678_v36 = vcombine.low %v587_v16, %v673_v35  ;;  %v679_v37 = vcombine.high %v587_v16, %v673_v35 }
 0x1ea   : > { %v686_v41 = vrot.slane %v678_v36, %v3248_v32  ;;  %v693_v42 = vrot.slane %v679_v37, %v3248_v32 }
 0x1eb   : > { %v1050_v43 = vpop.permute.xlu1 %1049  ;;  %v1053_v48 = vpop.permute.xlu0 %1052 }
 0x1ec   : > { %v710_v44 = vcombine.low %v686_v41, %v702_v39  ;;  %v711_v45 = vcombine.high %v686_v41, %v702_v39  ;;  %v726_v46 = vcombine.low %v693_v42, %v709_v40  ;;  %v727_v47 = vcombine.high %v693_v42, %v709_v40 }
 0x1ed   : > { %v1058_v53 = vcombine.low %v1044_v18, %v1053_v48  ;;  %v1059_v54 = vcombine.high %v1044_v18, %v1053_v48 }
 0x1ee   : > { %v718_v49 = vrot.slane %v710_v44, %v3250_v38  ;;  %v725_v50 = vrot.slane %v711_v45, %v3250_v38  ;;  %v734_v51 = vrot.slane %v726_v46, %v3250_v38  ;;  %v741_v52 = vrot.slane %v727_v47, %v3250_v38 }
 0x1ef   : > { %v1056_v55 = vpop.permute.xlu1 %1055  ;;  %v1066_v3 = vrot.slane %v1058_v53, %v3248_v32  ;;  %v1073_v4 = vrot.slane %v1059_v54, %v3248_v32  ;;  %v821_v54 = vpop.permute.xlu0 %820 }
 0x1f0   : > { %v746_v56 = vcombine.low %v718_v49, %v725_v50  ;;  %v2303_v57 = vcombine.high %v718_v49, %v725_v50  ;;  %v762_v58 = vcombine.low %v734_v51, %v741_v52  ;;  %v2304_v59 = vcombine.high %v734_v51, %v741_v52 }
 0x1f1   : > { %v1074_v60 = vcombine.low %v1050_v43, %v1056_v55  ;;  %v1075_v61 = vcombine.high %v1050_v43, %v1056_v55 }
 0x1f2   : > { %v753_v62 = vrot.slane %v746_v56, %v3248_v32  ;;  %v761_v63 = vrot.slane %v2303_v57, %v3248_v32  ;;  %v769_v1 = vrot.slane %v762_v58, %v3248_v32  ;;  %v777_v2 = vrot.slane %v2304_v59, %v3248_v32 }
 0x1f3   : > { %v1082_v5 = vrot.slane %v1074_v60, %v3248_v32  ;;  %v1089_v6 = vrot.slane %v1075_v61, %v3248_v32  ;;  %v824_v55 = vpop.permute.xlu1 %823  ;;  %v827_v58 = vpop.permute.xlu0 %826 }
 0x1f4   : > { %v778_v7 = vcombine.low %v753_v62, %v761_v63  ;;  %v779_v8 = vcombine.high %v753_v62, %v761_v63  ;;  %v794_v9 = vcombine.low %v769_v1, %v777_v2  ;;  %v795_v10 = vcombine.high %v769_v1, %v777_v2 }
 0x1f5   : > { %v1090_v11 = vcombine.low %v1066_v3, %v1082_v5  ;;  %v1091_v12 = vcombine.high %v1066_v3, %v1082_v5  ;;  %v1106_v13 = vcombine.low %v1073_v4, %v1089_v6  ;;  %v1107_v14 = vcombine.high %v1073_v4, %v1089_v6 }
 0x1f6   : > { %v786_v15 = vrot.slane %v778_v7, %v3250_v38  ;;  %v793_v16 = vrot.slane %v779_v8, %v3250_v38  ;;  %v802_v17 = vrot.slane %v794_v9, %v3250_v38  ;;  %v809_v18 = vrot.slane %v795_v10, %v3250_v38 }
 0x1f7   : > { %v1098_v19 = vrot.slane %v1090_v11, %v3250_v38  ;;  %v1105_v21 = vrot.slane %v1091_v12, %v3250_v38  ;;  %v1114_v22 = vrot.slane %v1106_v13, %v3250_v38  ;;  %v1121_v23 = vrot.slane %v1107_v14, %v3250_v38 }
 0x1f8   : > { %v810_v24 = vcombine.low %v786_v15, %v802_v17  ;;  %v811_v25 = vcombine.high %v786_v15, %v802_v17  ;;  %v812_v26 = vcombine.low %v793_v16, %v809_v18  ;;  %v813_v27 = vcombine.high %v793_v16, %v809_v18 }
 0x1f9   : > { %v1126_v28 = vcombine.low %v1098_v19, %v1105_v21  ;;  %v2308_v29 = vcombine.high %v1098_v19, %v1105_v21  ;;  %v1142_v30 = vcombine.low %v1114_v22, %v1121_v23  ;;  %v2309_v31 = vcombine.high %v1114_v22, %v1121_v23 }
 0x1fa   : > { %815 = vst.msk [vmem:[#allocation2] sm:$0xff] %vm814_vm2, %v810_v24  ;;  %816 = vst.msk [vmem:[#allocation2 + $0x8] sm:$0xff] %vm814_vm2, %v811_v25  ;;  %v829_v56 = vcombine.low %v3243_v20, %v824_v55  ;;  %v830_v57 = vcombine.high %v3243_v20, %v824_v55  ;;  %v845_v59 = vcombine.low %v821_v54, %v827_v58 }
 0x1fb   : > { %817 = vst.msk [vmem:[#allocation2 + $0x10] sm:$0xff] %vm814_vm2, %v812_v26  ;;  %818 = vst.msk [vmem:[#allocation2 + $0x18] sm:$0xff] %vm814_vm2, %v813_v27  ;;  %v1133_v33 = vrot.slane %v1126_v28, %v3248_v32  ;;  %v1141_v34 = vrot.slane %v2308_v29, %v3248_v32  ;;  %v1149_v35 = vrot.slane %v1142_v30, %v3248_v32 }
 0x1fc   : > { %v1157_v36 = vrot.slane %v2309_v31, %v3248_v32  ;;  %v846_v60 = vcombine.high %v821_v54, %v827_v58  ;;  %v837_v61 = vrot.slane %v829_v56, %v3248_v32  ;;  %v844_v62 = vrot.slane %v830_v57, %v3248_v32 }
 0x1fd   : > { %v1158_v37 = vcombine.low %v1133_v33, %v1141_v34  ;;  %v1159_v43 = vcombine.high %v1133_v33, %v1141_v34  ;;  %v853_v63 = vrot.slane %v845_v59, %v3248_v32 }
 0x1fe   : > { %v1174_v39 = vcombine.low %v1149_v35, %v1157_v36  ;;  %v1175_v44 = vcombine.high %v1149_v35, %v1157_v36  ;;  %v860_v1 = vrot.slane %v846_v60, %v3248_v32 }
 0x1ff   : > { %v1166_v40 = vrot.slane %v1158_v37, %v3250_v38  ;;  %v1173_v48 = vrot.slane %v1159_v43, %v3250_v38  ;;  %v861_v2 = vcombine.low %v837_v61, %v853_v63  ;;  %v862_v3 = vcombine.high %v837_v61, %v853_v63 }
 0x200   : > { %v1182_v41 = vrot.slane %v1174_v39, %v3250_v38  ;;  %v1189_v49 = vrot.slane %v1175_v44, %v3250_v38  ;;  %v877_v4 = vcombine.low %v844_v62, %v860_v1  ;;  %v878_v5 = vcombine.high %v844_v62, %v860_v1 }
 0x201   : > { %v1194_v42 = vld [vmem:[#allocation2] sm:$0xff]  ;;  %v1195_v46 = vld [vmem:[#allocation2 + $0x8] sm:$0xff]  ;;  %v869_v6 = vrot.slane %v861_v2, %v3250_v38  ;;  %v876_v7 = vrot.slane %v862_v3, %v3250_v38 }
 0x202   : > { %2399 = vmatpush3.xpose.msk.msra.mxu1 %vm814_vm2, %v1194_v42  ;;  %v1190_v45 = vcombine.low %v1166_v40, %v1182_v41  ;;  %v1191_v47 = vcombine.high %v1166_v40, %v1182_v41  ;;  %v1196_v50 = vld [vmem:[#allocation2 + $0x10] sm:$0xff]  ;;  %v1192_v51 = vcombine.low %v1173_v48, %v1189_v49  ;;  %v1197_v52 = vld [vmem:[#allocation2 + $0x18] sm:$0xff]  ;;  %v1193_v53 = vcombine.high %v1173_v48, %v1189_v49 }
 0x203   : > { %2403 = vmatprep.subr.mxu1 %v2923_v0  ;;  %v885_v20 = vrot.slane %v877_v4, %v3250_v38  ;;  %v892_v8 = vrot.slane %v878_v5, %v3250_v38  ;;  %v897_v9 = vcombine.low %v869_v6, %v876_v7  ;;  %v2305_v10 = vcombine.high %v869_v6, %v876_v7  ;;  %v1999_v5 = vld [vmem:[#allocation16 + $0x18] sm:$0xff] }
 0x205   : > { %2401 = vmatmul.mubr.msk.f32.vlgmr.msra.gmra.mxu1 %vm814_vm2, %v1190_v45  ;;  %v913_v11 = vcombine.low %v885_v20, %v892_v8  ;;  %v2306_v12 = vcombine.high %v885_v20, %v892_v8  ;;  %v904_v13 = vrot.slane %v897_v9, %v3248_v32  ;;  %v912_v14 = vrot.slane %v2305_v10, %v3248_v32 }
 0x206   : > { %2404 = vmatpush3.xpose.msk.msra.mxu1 %vm814_vm2, %v1195_v46  ;;  %2405 = vmatprep.mubr.msk.f32.mxu1 %vm2924_vm0, %v2923_v0 }
 0x207   : > { %2408 = vmatprep.subr.mxu1 %v2923_v0  ;;  %v920_v15 = vrot.slane %v913_v11, %v3248_v32  ;;  %v928_v16 = vrot.slane %v2306_v12, %v3248_v32  ;;  %v929_v17 = vcombine.low %v904_v13, %v912_v14  ;;  %v930_v18 = vcombine.high %v904_v13, %v912_v14 }
 0x209   : > { %2406 = vmatmul.mubr.msk.f32.vlgmr.msra.gmra.mxu1 %vm814_vm2, %v1191_v47  ;;  %v945_v19 = vcombine.low %v920_v15, %v928_v16  ;;  %v946_v21 = vcombine.high %v920_v15, %v928_v16  ;;  %v937_v22 = vrot.slane %v929_v17, %v3250_v38  ;;  %v944_v23 = vrot.slane %v930_v18, %v3250_v38 }
 0x20a   : > { %2409 = vmatpush3.xpose.msk.msra.mxu1 %vm814_vm2, %v1196_v50  ;;  %2410 = vmatprep.mubr.msk.f32.mxu1 %vm2924_vm0, %v2923_v0 }
 0x20b   : > { %2413 = vmatprep.subr.mxu1 %v2923_v0  ;;  %v953_v24 = vrot.slane %v945_v19, %v3250_v38  ;;  %v960_v25 = vrot.slane %v946_v21, %v3250_v38 }
 0x20d   : > { %2411 = vmatmul.mubr.msk.f32.vlgmr.msra.gmra.mxu1 %vm814_vm2, %v1192_v51  ;;  %v961_v26 = vcombine.low %v937_v22, %v953_v24  ;;  %v962_v27 = vcombine.high %v937_v22, %v953_v24  ;;  %v963_v28 = vcombine.low %v944_v23, %v960_v25  ;;  %v964_v29 = vcombine.high %v944_v23, %v960_v25 }
 0x20e   : > { %2414 = vmatpush3.xpose.msk.msra.mxu1 %vm814_vm2, %v1197_v52  ;;  %2415 = vmatprep.mubr.msk.f32.mxu1 %vm2924_vm0, %v2923_v0 }
 0x20f   : > { %2423 = vmatprep.subr.mxu1 %v2923_v0  ;;  %965 = vst.msk [vmem:[#allocation3] sm:$0xff] %vm814_vm2, %v961_v26  ;;  %966 = vst.msk [vmem:[#allocation3 + $0x8] sm:$0xff] %vm814_vm2, %v962_v27 }
 0x210   : > { %967 = vst.msk [vmem:[#allocation3 + $0x10] sm:$0xff] %vm814_vm2, %v963_v28  ;;  %968 = vst.msk [vmem:[#allocation3 + $0x18] sm:$0xff] %vm814_vm2, %v964_v29 }
 0x211   : > { %2416 = vmatmul.mubr.msk.f32.vlgmr.msra.gmra.mxu1 %vm814_vm2, %v1193_v53 }
 0x212   : > { %2425 = vmatprep.mubr.msk.f32.mxu1 %vm2924_vm0, %v2923_v0 }
 0x216   : > { %v1198_v30 = vld [vmem:[#allocation3] sm:$0xff]  ;;  %v1199_v31 = vld [vmem:[#allocation3 + $0x8] sm:$0xff] }
 0x217   : > { %2419 = vmatpush3.msra.mxu0 %v1198_v30  ;;  %2424 = vmatpush3.msra.mxu1 %v1199_v31  ;;  %v1200_v59 = vld [vmem:[#allocation3 + $0x10] sm:$0xff]  ;;  %v1201_v62 = vld [vmem:[#allocation3 + $0x18] sm:$0xff] }
 0x218   : > { %2428 = vmatprep.subr.mxu0 %v2923_v0  ;;  %2433 = vmatprep.subr.mxu1 %v2923_v0 }
 0x2c5   : > { %v1275_v33 = vpop.f32.mrf.mxu1 }
 0x2c6   : > { %v1507_v34 = vsel %vm814_vm2, %v1275_v33, -inf }
 0x2c7   : > { %1508 = vmax.xlane.f32.xlu0 %v1507_v34  ;;  %v2402_v35 = vpop.f32.mrf.mxu1 }
 0x2c9   : > { %v1351_v36 = vpop.f32.mrf.mxu1 }
 0x2ca   : > { %v1510_v37 = vsel %vm814_vm2, %v1351_v36, -inf }
 0x2cb   : > { %1511 = vmax.xlane.f32.xlu1 %v1510_v37  ;;  %v2407_v39 = vpop.f32.mrf.mxu1 }
 0x2cd   : > { %v1427_v40 = vpop.f32.mrf.mxu1 }
 0x2ce   : > { %v1513_v41 = vsel %vm814_vm2, %v1427_v40, -inf }
 0x2cf   : > { %1514 = vmax.xlane.f32.xlu1 %v1513_v41  ;;  %v2412_v42 = vpop.f32.mrf.mxu1  ;;  %v1997_v41 = vld [vmem:[#allocation16 + $0x8] sm:$0xff] }
 0x2d1   : > { %v1503_v43 = vpop.f32.mrf.mxu1 }
 0x2d2   : > { %v1516_v44 = vsel %vm814_vm2, %v1503_v43, -inf }
 0x2d3   : > { %1517 = vmax.xlane.f32.xlu0 %v1516_v44  ;;  %v2417_v45 = vpop.f32.mrf.mxu1 }
 0x350   : > { %v1509_v46 = vpop.xlane.xlu0 %1508 }
 0x351   : > { %v1519_v47 = vsub.f32 %v1275_v33, %v1509_v46 }
 0x353   : > { %v1523_v48 = vmul.f32 1.442695, %v1519_v47 }
 0x354   : > { %v1512_v49 = vpop.xlane.xlu1 %1511 }
 0x355   : > { %2579 = vpow2.f32 %v1523_v48  ;;  %v1520_v50 = vsub.f32 %v1351_v36, %v1512_v49 }
 0x357   : > { %v1525_v51 = vmul.f32 1.442695, %v1520_v50  ;;  %v1996_v50 = vld [vmem:[#allocation16] sm:$0xff] }
 0x358   : > { %v1515_v52 = vpop.xlane.xlu1 %1514 }
 0x359   : > { %2581 = vpow2.f32 %v1525_v51  ;;  %v1521_v53 = vsub.f32 %v1427_v40, %v1515_v52  ;;  %v1998_v40 = vld [vmem:[#allocation16 + $0x10] sm:$0xff] }
 0x35b   : > { %v1527_v54 = vmul.f32 1.442695, %v1521_v53 }
 0x35c   : > { %v1518_v55 = vpop.xlane.xlu0 %1517 }
 0x35d   : > { %2583 = vpow2.f32 %v1527_v54  ;;  %v1522_v56 = vsub.f32 %v1503_v43, %v1518_v55 }
 0x35f   : > { %v1529_v57 = vmul.f32 1.442695, %v1522_v56 }
 0x361   : > { %2585 = vpow2.f32 %v1529_v57 }
 0x362   : > { %v2580_v58 = vpop.eup %2579 }
 0x363   : > { %2421 = vmatmul.mubr.msk.f32.vlgmr.msra.gmra.mxu0 %vm814_vm2, %v2580_v58  ;;  %v1531_v60 = vsel %vm814_vm2, %v2580_v58, 0.0 }
 0x364   : > { %2429 = vmatpush3.msra.mxu0 %v1200_v59  ;;  %1532 = vadd.xlane.f32.xlu0 %v1531_v60 }
 0x365   : > { %2430 = vmatprep.mubr.msk.f32.mxu0 %vm2924_vm0, %v2923_v0  ;;  %2438 = vmatprep.subr.mxu0 %v2923_v0 }
 0x366   : > { %v2582_v61 = vpop.eup %2581 }
 0x367   : > { %2426 = vmatmul.mubr.msk.f32.vlgmr.msra.gmra.mxu1 %vm814_vm2, %v2582_v61  ;;  %v1534_v63 = vsel %vm814_vm2, %v2582_v61, 0.0 }
 0x368   : > { %2434 = vmatpush3.msra.mxu1 %v1201_v62  ;;  %1535 = vadd.xlane.f32.xlu1 %v1534_v63 }
 0x369   : > { %2435 = vmatprep.mubr.msk.f32.mxu1 %vm2924_vm0, %v2923_v0 }
 0x36a   : > { %v2584_v1 = vpop.eup %2583 }
 0x36b   : > { %2431 = vmatmul.mubr.msk.f32.vlgmr.msra.gmra.mxu0 %vm814_vm2, %v2584_v1  ;;  %v1537_v2 = vsel %vm814_vm2, %v2584_v1, 0.0 }
 0x36c   : > { %1538 = vadd.xlane.f32.xlu0 %v1537_v2  ;;  %2446 = vmatprep.mubr.msk.f32.mxu0 %vm2924_vm0, %v2923_v0 }
 0x36d   : > { %2439 = vmatpush3.msra.mxu0 %v1999_v5 }
 0x36e   : > { %v2586_v3 = vpop.eup %2585  ;;  %2440 = vmatprep.subr.mxu0 %v2923_v0 }
 0x36f   : > { %2436 = vmatmul.mubr.msk.f32.vlgmr.msra.gmra.mxu1 %vm814_vm2, %v2586_v3  ;;  %v1540_v4 = vsel %vm814_vm2, %v2586_v3, 0.0  ;;  %2441 = vmatpush3.msra.mxu0 %v1998_v40 }
 0x370   : > { %1541 = vadd.xlane.f32.xlu1 %v1540_v4  ;;  %2442 = vmatprep.subr.mxu0 %v2923_v0 }
 0x371   : > { %2443 = vmatpush3.msra.mxu0 %v1997_v41 }
 0x372   : > { %2444 = vmatprep.subr.mxu0 %v2923_v0 }
 0x373   : > { %2445 = vmatpush3.msra.mxu0 %v1996_v50 }
 0x3ed   : > { %v1533_v6 = vpop.xlane.xlu0 %1532 }
 0x3f1   : > { %v1536_v7 = vpop.xlane.xlu1 %1535 }
 0x3f5   : > { %v1539_v20 = vpop.xlane.xlu0 %1538 }
 0x3f6   : > { %2587 = vrcp.f32 %v1539_v20 }
 0x3f7   : > { %2589 = vrcp.f32 %v1533_v6 }
 0x3f8   : > { %2591 = vrcp.f32 %v1536_v7  ;;  %v2000_v7 = vld [vmem:[%s443_s16] sm:$0xff] }
 0x3f9   : > { %v1542_v8 = vpop.xlane.xlu1 %1541 }
 0x3fa   : > { %2593 = vrcp.f32 %v1542_v8 }
 0x403   : > { %v2588_v13 = vpop.eup %2587 }
 0x404   : > { %v2590_v16 = vpop.eup %2589 }
 0x405   : > { %v2592_v18 = vpop.eup %2591 }
 0x407   : > { %v2594_v21 = vpop.eup %2593 }
 0x423   : > { %v1612_v9 = vpop.f32.mrf.mxu0 }
 0x424   : > { %v1839_v19 = vmul.f32 %v2590_v16, %v1612_v9 }
 0x425   : > { %v2422_v10 = vpop.f32.mrf.mxu0 }
 0x427   : > { %v1685_v11 = vpop.f32.mrf.mxu1 }
 0x428   : > { %v1840_v23 = vmul.f32 %v2592_v18, %v1685_v11 }
 0x429   : > { %v2427_v12 = vpop.f32.mrf.mxu1 }
 0x42b   : > { %v1758_v14 = vpop.f32.mrf.mxu0 }
 0x42c   : > { %v1841_v15 = vmul.f32 %v2588_v13, %v1758_v14 }
 0x42d   : > { %v2432_v17 = vpop.f32.mrf.mxu0 }
 0x42e   : > { %v1843_v24 = vcombine.low %v1839_v19, %v1841_v15  ;;  %v1844_v25 = vcombine.high %v1839_v19, %v1841_v15 }
 0x42f   : > { %v1831_v22 = vpop.f32.mrf.mxu1 }
 0x430   : > { %v1842_v26 = vmul.f32 %v2594_v21, %v1831_v22  ;;  %v1851_v30 = vrot.slane %v1843_v24, %v3248_v32  ;;  %v1858_v31 = vrot.slane %v1844_v25, %v3248_v32 }
 0x431   : > { %v2437_v27 = vpop.f32.mrf.mxu1 }
 0x432   : > { %v1859_v28 = vcombine.low %v1840_v23, %v1842_v26  ;;  %v1860_v29 = vcombine.high %v1840_v23, %v1842_v26 }
 0x434   : > { %v1867_v33 = vrot.slane %v1859_v28, %v3248_v32  ;;  %v1874_v34 = vrot.slane %v1860_v29, %v3248_v32 }
 0x436   : > { %v1875_v35 = vcombine.low %v1851_v30, %v1867_v33  ;;  %v1876_v36 = vcombine.high %v1851_v30, %v1867_v33  ;;  %v1891_v37 = vcombine.low %v1858_v31, %v1874_v34  ;;  %v1892_v39 = vcombine.high %v1858_v31, %v1874_v34 }
 0x438   : > { %v1883_v42 = vrot.slane %v1875_v35, %v3250_v38  ;;  %v1890_v43 = vrot.slane %v1876_v36, %v3250_v38  ;;  %v1899_v44 = vrot.slane %v1891_v37, %v3250_v38  ;;  %v1906_v45 = vrot.slane %v1892_v39, %v3250_v38 }
 0x43a   : > { %v1911_v46 = vcombine.low %v1883_v42, %v1890_v43  ;;  %v2322_v47 = vcombine.high %v1883_v42, %v1890_v43  ;;  %v1927_v48 = vcombine.low %v1899_v44, %v1906_v45  ;;  %v2323_v49 = vcombine.high %v1899_v44, %v1906_v45 }
 0x43c   : > { %v1918_v51 = vrot.slane %v1911_v46, %v3248_v32  ;;  %v1926_v52 = vrot.slane %v2322_v47, %v3248_v32  ;;  %v1934_v53 = vrot.slane %v1927_v48, %v3248_v32  ;;  %v1942_v54 = vrot.slane %v2323_v49, %v3248_v32 }
 0x43e   : > { %v1944_v55 = vcombine.high %v1918_v51, %v1926_v52  ;;  %v1960_v56 = vcombine.high %v1934_v53, %v1942_v54  ;;  %v1943_v57 = vcombine.low %v1918_v51, %v1926_v52  ;;  %v1959_v58 = vcombine.low %v1934_v53, %v1942_v54 }
 0x440   : > { %v1958_v59 = vrot.slane %v1944_v55, %v3250_v38  ;;  %v1974_v60 = vrot.slane %v1960_v56, %v3250_v38  ;;  %v1951_v0 = vrot.slane %v1943_v57, %v3250_v38  ;;  %v1967_v61 = vrot.slane %v1959_v58, %v3250_v38 }
 0x442   : > { %v1977_v62 = vcombine.low %v1958_v59, %v1974_v60  ;;  %v1976_v63 = vcombine.high %v1951_v0, %v1967_v61  ;;  %v1975_v1 = vcombine.low %v1951_v0, %v1967_v61  ;;  %v1978_v32 = vcombine.high %v1958_v59, %v1974_v60 }
 0x444   : > { %1984 = vrot.lane.b32.xlu1 %v1977_v62, %s2930_s1  ;;  %1980 = vrot.lane.b32.xlu0 %v1976_v63, %s2931_s19 }
 0x448   : > { %1988 = vrot.lane.b32.xlu1 %v1978_v32, %s2932_s22 }
 0x4b6   : > { %v1985_v2 = vpop.permute.xlu1 %1984  ;;  %v1981_v3 = vpop.permute.xlu0 %1980 }
 0x4b7   : > { %v1991_v4 = vsel %vm814_vm2, %v1975_v1, %v1981_v3 }
 0x4b8   : > { %v1993_v5 = vsel %vm1992_vm3, %v1991_v4, %v1985_v2 }
 0x4ba   : > { %v1989_v38 = vpop.permute.xlu1 %1988 }
 0x4bb   : > { %v1995_v6 = vsel %vm1994_vm4, %v1993_v5, %v1989_v38 }
 0x4bc   : > { %2447 = vmatmul.mubr.msk.f32.vlgmr.msra.gmra.mxu0 %vm517_vm1, %v1995_v6 }
 0x57c   : > { %v2070_v20 = vpop.f32.mrf.mxu0 }
 0x57d   : > { %v2071_v8 = vadd.f32 %v2070_v20, %v2000_v7 }
 0x57e   : > { %v2448_v9 = vpop.f32.mrf.mxu0 }
 0x57f   : > { %2074 = vst.msk [vmem:[%s506_s4] sm:$0xff] %vm517_vm1, %v2071_v8 }
 0x580   : > { %2824 = shalt.err (!%p2821_p12)
}
 0x581   : > { %s2825_s5 = scalar_lea.hbm %s3379_s26, 128  ;;  %s2829_s23 = scalar_lea.hbm %s3430_s8, 256 }
 0x582   : > { %p2826_p1 = scmp.ne.s32.totalorder %s3379_s26, %s2825_s5  ;;  %p2830_p9 = scmp.lt.s32.totalorder %s3379_s26, %s3430_s8 }
 0x583   : > { %p2831_p11 = scmp.lt.s32.totalorder %s2829_s23, %s2825_s5 }
 0x584   : > { %p2827_p8 = pnand %p2826_p1, %p3479_p2 }
 0x585   : > { %p2832_p13 = por %p2831_p11, %p2830_p9 }
 0x586   : > { %p2828_p3 = pneg %p2827_p8 }
 0x588   : > { %p2833_p4 = pnand %p2832_p13, %p2828_p3 }
 0x58a   : > { %2836 = shalt.err (!%p2833_p4)
}
 0x58b   : > { %2473 = dma.vmem_to_hbm [thread:$0]  (%p3479_p2), %s2091_s20, 128, %s3379_s26, %s2076_s14  }
 0x58c PF: > { %s3480_s13 = sld [smem:[#allocation26_spill]]  ;;  %p3483_p10 = scmp.ge.s32.totalorder %s2911_s10, 2 }
 0x58d   : > { %s3481_s18 = sld [smem:[#allocation28_spill]] }
 0x592   : > { %s2102_s1 = sand.u32 1, %s3480_s13  }
 0x593   : > { %p3482_p0 = scmp.ne.s32.totalorder %s3481_s18, 0  ;;  %s2103_s19 = scalar_lea.sflag [#allocation6], %s2102_s1 }
 0x595   : > { %p2502_p6 = pnand %p3483_p10, %p3482_p0 }
 0x597   : > { %p2503_p5 = pneg %p2502_p6 }
 0x599   : > { %2886 = dma.done.wait (%p2503_p5), %s2103_s19, 128  }
 0x59a   : > { %2888 = vsyncadd (%p2503_p5), %s2103_s19, 4294967168  ;;  %s32_s10 = sadd.s32 1, %s2911_s10   ;;  %s3484_s21 = sld [smem:[#allocation30_spill]] }
 0x59b   : > { %p29_p7 = scmp.ge.s32.totalorder %s32_s10, 4   ;;  %s3485_s30 = sld [smem:[#allocation27_spill]] }
 0x59c   : > { %s3486_s9 = sld [smem:[#allocation29_spill]]  ;;  %s3487_s27 = smov %s2895_s28 }
 0x59d   : > { %s3488_s28 = smov %s2899_s29  ;;  %31 = sbr.rel (!%p29_p7) target bundleno = 17 (0x11), region = 154 }
 0x5a0   : > { %s3489_s29 = smov %s3484_s21 }
 0x5a2   :  { %2108 = vsyncpa [#allocation5], 1 }
 0x5a3   :  { %2110 = vsyncpa [#allocation5 + $0x1], 1 }
 0x5a4   :  { %2111 = vsyncpa [#allocation8], 1 }
 0x5a5   :  { %2113 = vsyncpa [#allocation8 + $0x1], 1 }
 0x5a6   :  { %2114 = vsyncpa [#allocation11], 1 }
 0x5a7   :  { %2116 = vsyncpa [#allocation11 + $0x1], 1 }
 0x5a8   :  { %2117 = vsyncpa [#allocation14], 1 }
 0x5a9   :  { %2118 = vsyncpa [#allocation17], 1 }
 0x5aa   :  { %2119 = vsyncpa [#allocation6], 1 }
 0x5ab   :  { %2121 = vsyncpa [#allocation6 + $0x1], 1 }

</bundles_post_ra>
